<compile_context>
chip_gen: v7x
topology: tpu7x:2x2x1
jax: 0.10.0
libtpu: 0.0.40
codegen_flags: <defaults>
</compile_context>

<pallas_src>
import functools
import math

import jax
import jax.numpy as jnp
from jax.experimental import pallas as pl
from jax.experimental.pallas import tpu as pltpu

SCALE = math.sqrt(0.5)   # plain Python float -> jaxpr literal (no captured const)
LANE = 128
SUBLANE = 8


def _round_up(x, m):
    return (x + m - 1) // m * m


def _bf16(x):
    return x.astype(jnp.bfloat16)


def _pad_axis(x, axis, target, value=0.0):
    pad = target - x.shape[axis]
    if pad <= 0:
        return x
    widths = [(0, 0)] * x.ndim
    widths[axis] = (0, pad)
    return jnp.pad(x, widths, constant_values=value)


# ----------------------------------------------------------------------------
# fused kernel: one grid step == (batch element, T tile); whole block fused
# ----------------------------------------------------------------------------

def _decoder_block_feedback_kernel(
        emb_ref, xcols_ref,
        wa_ref, wb_ref, ba_ref, bb_ref,
        wh2e_ref, bh2e_ref,
        we2h_ref, be2h_ref,
        wpe2h_ref, bpe2h_ref,
        encT_ref, encC_ref, predT_ref, predC_ref,
        pattn_ref, out_ref,
        *, n_enc, n_dec, scale):
    Hp = out_ref.shape[2]
    KHp = xcols_ref.shape[2]

    embedded = emb_ref[0]                       # [tm, Ep]  f32
    x_cols = xcols_ref[0]                       # [tm, K*Hp] bf16 (causal im2col)

    # Residual = last conv tap == conv_in tile (lane-aligned static slice).
    conv_in = x_cols[:, KHp - Hp:].astype(jnp.float32)

    # Causal Conv1d as a single im2col matmul; GLU via two half-width matmuls
    # (no lane-crossing slice of a [tm, 2H] accumulator).
    a = jnp.dot(x_cols, wa_ref[...], preferred_element_type=jnp.float32) + ba_ref[...]
    g = jnp.dot(x_cols, wb_ref[...], preferred_element_type=jnp.float32) + bb_ref[...]
    conved = a * jax.nn.sigmoid(g)              # [tm, Hp] f32

    # Shared q-side projection (attention_hid2emb).
    conved_emb = jnp.dot(_bf16(conved), wh2e_ref[...],
                         preferred_element_type=jnp.float32) + bh2e_ref[...]
    combined = (embedded + conved_emb) * scale
    combined_bf = _bf16(combined)

    def attend(kT_ref, vC_ref, w_ref, b_ref, n_valid):
        e = jnp.dot(combined_bf, kT_ref[0], preferred_element_type=jnp.float32)
        if n_valid < e.shape[1]:                # mask padded key columns (static)
            mask = jax.lax.broadcasted_iota(jnp.int32, e.shape, 1) < n_valid
            e = jnp.where(mask, e, -1e30)
        m = jnp.max(e, axis=-1, keepdims=True)
        p = jnp.exp(e - m)
        attn = p / jnp.sum(p, axis=-1, keepdims=True)        # exact softmax
        ctx = jnp.dot(_bf16(attn), vC_ref[0], preferred_element_type=jnp.float32)
        att = jnp.dot(_bf16(ctx), w_ref[...],
                      preferred_element_type=jnp.float32) + b_ref[...]
        return attn, att

    _, att_enc = attend(encT_ref, encC_ref, we2h_ref, be2h_ref, n_enc)
    p_attn, att_fb = attend(predT_ref, predC_ref, wpe2h_ref, bpe2h_ref, n_dec)

    # (conved+att_enc)*s + (conved+att_fb)*s, then block residual * s.
    c_sum = (2.0 * conved + att_enc + att_fb) * scale
    out = (c_sum + conv_in) * scale

    pattn_ref[0] = p_attn.astype(pattn_ref.dtype)
    out_ref[0] = out.astype(out_ref.dtype)


# ----------------------------------------------------------------------------
# wrapper
# ----------------------------------------------------------------------------

def _choose_tm(T, per_row_bytes, fixed_bytes, budget_bytes):
    tm = min(256, _round_up(T, SUBLANE))
    while tm > SUBLANE and fixed_bytes + tm * per_row_bytes > budget_bytes:
        tm = _round_up(tm // 2, SUBLANE)
    return tm


def decoder_block_feedback(params, embedded, conv_in,
                           encoder_conved, encoder_combined,
                           pred_conved, pred_combined,
                           *, kernel_size, pad_idx,
                           attn_dtype=jnp.float32, out_dtype=jnp.float32):
    """Channels-last forward of DecoderBlockFeedback. Returns (p_attention, conved)."""
    B, T, H = conv_in.shape
    E = embedded.shape[-1]
    Se = encoder_conved.shape[1]
    Sd = pred_conved.shape[1]
    K = kernel_size
    # TODO(synk): nn.Dropout on conv_in is eval-mode identity here (no RNG mask).

    Hp, Ep = _round_up(H, LANE), _round_up(E, LANE)
    Sep, Sdp = _round_up(Se, LANE), _round_up(Sd, LANE)
    KHp = K * Hp

    # --- VMEM-budgeted T tile (sized for v7x 64 MiB; fine on v5e/v6e) --------
    fixed = ((2 * KHp * Hp + Hp * Ep + 2 * Ep * Hp) * 2          # weights, 1x bf16
             + 2 * 2 * 2 * (Ep * Sep + Ep * Sdp))                # K/V, 2x bf16
    per_row = (2 * (Ep * 4 + KHp * 2)                            # tiled inputs, 2x
               + 2 * (Sdp + Hp) * 4                              # tiled outputs, 2x
               + (Sep + Sdp + 6 * Hp + 3 * Ep) * 4)              # live f32 temps
    tm = _choose_tm(T, per_row, fixed, budget_bytes=40 * 1024 * 1024)
    Tp = _round_up(T, tm)
    vmem_limit = int(min(max((fixed + tm * per_row) * 2, 32 * 1024 * 1024),
                         48 * 1024 * 1024))

    # --- pad activations / K-V / weights to lane-dense shapes ----------------
    emb_p = _pad_axis(_pad_axis(embedded, 2, Ep), 1, Tp)         # [B,Tp,Ep] f32

    cin = _pad_axis(_pad_axis(conv_in, 2, Hp), 1, Tp)            # [B,Tp,Hp]
    xpad = jnp.pad(cin, ((0, 0), (K - 1, 0), (0, 0)),
                   constant_values=float(pad_idx))
    x_cols = _bf16(jnp.concatenate([xpad[:, k:k + Tp, :] for k in range(K)],
                                   axis=-1))                     # [B,Tp,K*Hp] bf16

    enc_T = _bf16(_pad_axis(_pad_axis(jnp.transpose(encoder_conved, (0, 2, 1)),
                                      1, Ep), 2, Sep))           # [B,Ep,Sep]
    enc_C = _bf16(_pad_axis(_pad_axis(encoder_combined, 1, Sep), 2, Ep))
    pred_T = _bf16(_pad_axis(_pad_axis(jnp.transpose(pred_conved, (0, 2, 1)),
                                       1, Ep), 2, Sdp))          # [B,Ep,Sdp]
    pred_C = _bf16(_pad_axis(_pad_axis(pred_combined, 1, Sdp), 2, Ep))

    conv_w = params['conv_w']                                    # [K, H, 2H]
    cw = _pad_axis(conv_w, 1, Hp)                                # zero-pad in-channels
    w_a = _bf16(_pad_axis(cw[..., :H], 2, Hp).reshape(KHp, Hp))
    w_b = _bf16(_pad_axis(cw[..., H:], 2, Hp).reshape(KHp, Hp))
    b_a = _pad_axis(params['conv_b'][:H].reshape(1, H), 1, Hp)
    b_b = _pad_axis(params['conv_b'][H:].reshape(1, H), 1, Hp)
    w_h2e = _bf16(_pad_axis(_pad_axis(params['attn_hid2emb_w'], 0, Hp), 1, Ep))
    b_h2e = _pad_axis(params['attn_hid2emb_b'].reshape(1, E), 1, Ep)
    w_e2h = _bf16(_pad_axis(_pad_axis(params['attn_emb2hid_w'], 0, Ep), 1, Hp))
    b_e2h = _pad_axis(params['attn_emb2hid_b'].reshape(1, H), 1, Hp)
    w_pe2h = _bf16(_pad_axis(_pad_axis(params['p_attn_emb2hid_w'], 0, Ep), 1, Hp))
    b_pe2h = _pad_axis(params['p_attn_emb2hid_b'].reshape(1, H), 1, Hp)

    # --- block specs ----------------------------------------------------------
    def tile3(last):
        return pl.BlockSpec((1, tm, last), lambda b, t: (b, t, 0))

    def full3(d1, d2):
        return pl.BlockSpec((1, d1, d2), lambda b, t: (b, 0, 0))

    def wspec(shape):   # grid-invariant weights: DMA once, single-buffered
        return pl.BlockSpec(shape, lambda b, t: (0, 0),
                            pipeline_mode=pl.Buffered(1))

    in_specs = [
        tile3(Ep),                 # embedded
        tile3(KHp),                # im2col conv input (residual = last tap)
        wspec((KHp, Hp)), wspec((KHp, Hp)),        # conv value / gate weights
        wspec((1, Hp)), wspec((1, Hp)),            # conv biases
        wspec((Hp, Ep)), wspec((1, Ep)),           # attention_hid2emb
        wspec((Ep, Hp)), wspec((1, Hp)),           # attention_emb2hid
        wspec((Ep, Hp)), wspec((1, Hp)),           # p_attention_emb2hid
        full3(Ep, Sep), full3(Sep, Ep),            # encoder K / V
        full3(Ep, Sdp), full3(Sdp, Ep),            # prediction K / V
    ]
    out_specs = (tile3(Sdp), tile3(Hp))
    out_shape = (jax.ShapeDtypeStruct((B, Tp, Sdp), attn_dtype),
                 jax.ShapeDtypeStruct((B, Tp, Hp), out_dtype))

    operands = (emb_p, x_cols, w_a, w_b, b_a, b_b, w_h2e, b_h2e,
                w_e2h, b_e2h, w_pe2h, b_pe2h, enc_T, enc_C, pred_T, pred_C)

    flops = 2 * B * Tp * (2 * KHp * Hp + Hp * Ep + Ep * Sep + Sep * Ep
                          + Ep * Hp + Ep * Sdp + Sdp * Ep + Ep * Hp)
    trans = B * Tp * (Hp + Sep + Sdp)
    bytes_accessed = (sum(int(x.size) * x.dtype.itemsize for x in operands)
                      + B * Tp * Sdp * jnp.dtype(attn_dtype).itemsize
                      + B * Tp * Hp * jnp.dtype(out_dtype).itemsize)

    kernel = functools.partial(_decoder_block_feedback_kernel,
                               n_enc=Se, n_dec=Sd, scale=SCALE)

    p_attn_p, out_p = pl.pallas_call(
        kernel,
        out_shape=out_shape,
        grid=(B, Tp // tm),
        in_specs=in_specs,
        out_specs=out_specs,
        compiler_params=pltpu.CompilerParams(
            dimension_semantics=("parallel", "parallel"),
            vmem_limit_bytes=vmem_limit),
        cost_estimate=pl.CostEstimate(flops=flops, transcendentals=trans,
                                      bytes_accessed=bytes_accessed),
    )(*operands)

    return p_attn_p[:, :T, :Sd], out_p[:, :T, :H]


# ----------------------------------------------------------------------------
# pure-JAX reference (same bf16 matmul convention) for correctness check
# ----------------------------------------------------------------------------

def decoder_block_feedback_ref(params, embedded, conv_in,
                               encoder_conved, encoder_combined,
                               pred_conved, pred_combined,
                               *, kernel_size, pad_idx):
    B, T, H = conv_in.shape
    K = kernel_size
    xpad = jnp.pad(conv_in, ((0, 0), (K - 1, 0), (0, 0)),
                   constant_values=float(pad_idx))
    acc = jnp.zeros((B, T, 2 * H), jnp.float32)
    for k in range(K):
        acc = acc + jnp.einsum('btc,co->bto', _bf16(xpad[:, k:k + T, :]),
                               _bf16(params['conv_w'][k]),
                               preferred_element_type=jnp.float32)
    acc = acc + params['conv_b']
    conved = acc[..., :H] * jax.nn.sigmoid(acc[..., H:])

    conved_emb = jnp.einsum('bth,he->bte', _bf16(conved),
                            _bf16(params['attn_hid2emb_w']),
                            preferred_element_type=jnp.float32) \
        + params['attn_hid2emb_b']
    combined = (embedded + conved_emb) * SCALE

    def attend(kc, kv, w, b):
        energy = jnp.einsum('bte,bse->bts', _bf16(combined), _bf16(kc),
                            preferred_element_type=jnp.float32)
        attn = jax.nn.softmax(energy, axis=-1)
        att = jnp.einsum('bts,bse->bte', _bf16(attn), _bf16(kv),
                         preferred_element_type=jnp.float32)
        att = jnp.einsum('bte,eh->bth', _bf16(att), _bf16(w),
                         preferred_element_type=jnp.float32) + b
        return attn, (conved + att) * SCALE

    _, c_enc = attend(encoder_conved, encoder_combined,
                      params['attn_emb2hid_w'], params['attn_emb2hid_b'])
    p_attn, c_fb = attend(pred_conved, pred_combined,
                          params['p_attn_emb2hid_w'], params['p_attn_emb2hid_b'])
    out = ((c_enc + c_fb) + conv_in) * SCALE
    return p_attn, out


# ----------------------------------------------------------------------------
# deterministic parameters
# ----------------------------------------------------------------------------

def make_params(key, hid_dim, emb_dim, kernel_size):
    ks = jax.random.split(key, 5)

    def lin(k, din, dout):
        kw, kb = jax.random.split(k)
        w = jax.random.normal(kw, (din, dout), jnp.float32) / jnp.sqrt(float(din))
        b = jax.random.normal(kb, (dout,), jnp.float32) * 0.01
        return w, b

    conv_w = jax.random.normal(ks[0], (kernel_size, hid_dim, 2 * hid_dim),
                               jnp.float32) / jnp.sqrt(float(kernel_size * hid_dim))
    conv_b = jax.random.normal(ks[1], (2 * hid_dim,), jnp.float32) * 0.01
    h2e_w, h2e_b = lin(ks[2], hid_dim, emb_dim)
    e2h_w, e2h_b = lin(ks[3], emb_dim, hid_dim)
    pe2h_w, pe2h_b = lin(ks[4], emb_dim, hid_dim)
    return {'conv_w': conv_w, 'conv_b': conv_b,
            'attn_hid2emb_w': h2e_w, 'attn_hid2emb_b': h2e_b,
            'attn_emb2hid_w': e2h_w, 'attn_emb2hid_b': e2h_b,
            'p_attn_emb2hid_w': pe2h_w, 'p_attn_emb2hid_b': pe2h_b}


# ----------------------------------------------------------------------------

if __name__ == "__main__":
    B, T_DEC, T_ENC = 2, 8, 10
    HID, EMB, KSIZE = 32, 16, 3
    PAD_IDX = 1.0

    root = jax.random.PRNGKey(0)
    kp, k1, k2, k3, k4, k5, k6 = jax.random.split(root, 7)
    params = make_params(kp, HID, EMB, KSIZE)

    embedded = jax.random.normal(k1, (B, T_DEC, EMB), jnp.float32)
    conv_in = jax.random.normal(k2, (B, T_DEC, HID), jnp.float32)
    enc_conved = jax.random.normal(k3, (B, T_ENC, EMB), jnp.float32)
    enc_combined = jax.random.normal(k4, (B, T_ENC, EMB), jnp.float32)
    pred_conved = jax.random.normal(k5, (B, T_DEC, EMB), jnp.float32)
    pred_combined = jax.random.normal(k6, (B, T_DEC, EMB), jnp.float32)

    fwd = jax.jit(functools.partial(decoder_block_feedback,
                                    kernel_size=KSIZE, pad_idx=PAD_IDX))
    p_attn, out = fwd(params, embedded, conv_in, enc_conved, enc_combined,
                      pred_conved, pred_combined)
    jax.block_until_ready((p_attn, out))

    ref_attn, ref_out = decoder_block_feedback_ref(
        params, embedded, conv_in, enc_conved, enc_combined,
        pred_conved, pred_combined, kernel_size=KSIZE, pad_idx=PAD_IDX)

    assert p_attn.shape == (B, T_DEC, T_DEC)
    assert out.shape == (B, T_DEC, HID)
    assert bool(jnp.all(jnp.isfinite(p_attn))) and bool(jnp.all(jnp.isfinite(out)))
    assert jnp.allclose(p_attn, ref_attn, atol=1e-2, rtol=1e-2)
    assert jnp.allclose(out, ref_out, atol=2e-2, rtol=2e-2)
    print("KERNEL_OK")
</pallas_src>

<mosaic_0001>
module attributes {stable_mosaic.version = 11 : i64} {
  func.func @_decoder_block_feedback_kernel(%arg0: i32, %arg1: i32, %arg2: memref<1x8x128xf32, #tpu.memory_space<vmem>>, %arg3: memref<1x8x384xbf16, #tpu.memory_space<vmem>>, %arg4: memref<384x128xbf16, #tpu.memory_space<vmem>>, %arg5: memref<384x128xbf16, #tpu.memory_space<vmem>>, %arg6: memref<1x128xf32, #tpu.memory_space<vmem>>, %arg7: memref<1x128xf32, #tpu.memory_space<vmem>>, %arg8: memref<128x128xbf16, #tpu.memory_space<vmem>>, %arg9: memref<1x128xf32, #tpu.memory_space<vmem>>, %arg10: memref<128x128xbf16, #tpu.memory_space<vmem>>, %arg11: memref<1x128xf32, #tpu.memory_space<vmem>>, %arg12: memref<128x128xbf16, #tpu.memory_space<vmem>>, %arg13: memref<1x128xf32, #tpu.memory_space<vmem>>, %arg14: memref<1x128x128xbf16, #tpu.memory_space<vmem>>, %arg15: memref<1x128x128xbf16, #tpu.memory_space<vmem>>, %arg16: memref<1x128x128xbf16, #tpu.memory_space<vmem>>, %arg17: memref<1x128x128xbf16, #tpu.memory_space<vmem>>, %arg18: memref<1x8x128xf32, #tpu.memory_space<vmem>>, %arg19: memref<1x8x128xf32, #tpu.memory_space<vmem>>) attributes {dimension_semantics = [#tpu.dimension_semantics<parallel>, #tpu.dimension_semantics<parallel>], iteration_bounds = array<i64: 2, 1>, scalar_prefetch = 0 : i64, scratch_operands = 0 : i64, tpu.core_type = #tpu.core_type<tc>, window_params = [{transform_indices = @transform_0, window_bounds = array<i64: 1, 8, 128>}, {transform_indices = @transform_1, window_bounds = array<i64: 1, 8, 384>}, {pipeline_mode = #tpu.pipeline_mode<synchronous>, transform_indices = @transform_2, window_bounds = array<i64: 384, 128>}, {pipeline_mode = #tpu.pipeline_mode<synchronous>, transform_indices = @transform_3, window_bounds = array<i64: 384, 128>}, {pipeline_mode = #tpu.pipeline_mode<synchronous>, transform_indices = @transform_4, window_bounds = array<i64: 1, 128>}, {pipeline_mode = #tpu.pipeline_mode<synchronous>, transform_indices = @transform_5, window_bounds = array<i64: 1, 128>}, {pipeline_mode = #tpu.pipeline_mode<synchronous>, transform_indices = @transform_6, window_bounds = array<i64: 128, 128>}, {pipeline_mode = #tpu.pipeline_mode<synchronous>, transform_indices = @transform_7, window_bounds = array<i64: 1, 128>}, {pipeline_mode = #tpu.pipeline_mode<synchronous>, transform_indices = @transform_8, window_bounds = array<i64: 128, 128>}, {pipeline_mode = #tpu.pipeline_mode<synchronous>, transform_indices = @transform_9, window_bounds = array<i64: 1, 128>}, {pipeline_mode = #tpu.pipeline_mode<synchronous>, transform_indices = @transform_10, window_bounds = array<i64: 128, 128>}, {pipeline_mode = #tpu.pipeline_mode<synchronous>, transform_indices = @transform_11, window_bounds = array<i64: 1, 128>}, {transform_indices = @transform_12, window_bounds = array<i64: 1, 128, 128>}, {transform_indices = @transform_13, window_bounds = array<i64: 1, 128, 128>}, {transform_indices = @transform_14, window_bounds = array<i64: 1, 128, 128>}, {transform_indices = @transform_15, window_bounds = array<i64: 1, 128, 128>}, {transform_indices = @transform_16, window_bounds = array<i64: 1, 8, 128>}, {transform_indices = @transform_17, window_bounds = array<i64: 1, 8, 128>}]} {
    %c0 = arith.constant 0 : index
    %c0_0 = arith.constant 0 : index
    %c0_1 = arith.constant 0 : index
    %0 = vector.load %arg2[%c0, %c0_0, %c0_1] : memref<1x8x128xf32, #tpu.memory_space<vmem>>, vector<1x8x128xf32>
    %1 = vector.shape_cast %0 : vector<1x8x128xf32> to vector<8x128xf32>
    %c0_2 = arith.constant 0 : index
    %c0_3 = arith.constant 0 : index
    %c0_4 = arith.constant 0 : index
    %2 = vector.load %arg3[%c0_2, %c0_3, %c0_4] : memref<1x8x384xbf16, #tpu.memory_space<vmem>>, vector<1x8x384xbf16>
    %3 = vector.shape_cast %2 : vector<1x8x384xbf16> to vector<8x384xbf16>
    %4 = vector.extract_strided_slice %3 {offsets = [0, 256], sizes = [8, 128], strides = [1, 1]} : vector<8x384xbf16> to vector<8x128xbf16>
    %5 = arith.extf %4 : vector<8x128xbf16> to vector<8x128xf32>
    %c0_5 = arith.constant 0 : index
    %c0_6 = arith.constant 0 : index
    %6 = vector.load %arg4[%c0_5, %c0_6] : memref<384x128xbf16, #tpu.memory_space<vmem>>, vector<384x128xbf16>
    %cst = arith.constant dense<0.000000e+00> : vector<8x128xf32>
    %7 = tpu.matmul %3, %6, %cst {dimension_numbers = #tpu.dot_dimension_numbers<[1], [0], [0], [1], [0, 0, 1, 1], [], []>} : vector<8x384xbf16>, vector<384x128xbf16>, vector<8x128xf32> -> vector<8x128xf32>
    %c0_7 = arith.constant 0 : index
    %c0_8 = arith.constant 0 : index
    %8 = vector.load %arg6[%c0_7, %c0_8] : memref<1x128xf32, #tpu.memory_space<vmem>>, vector<1x128xf32>
    %9 = vector.broadcast %8 : vector<1x128xf32> to vector<8x128xf32>
    %10 = arith.addf %7, %9 : vector<8x128xf32>
    %c0_9 = arith.constant 0 : index
    %c0_10 = arith.constant 0 : index
    %11 = vector.load %arg5[%c0_9, %c0_10] : memref<384x128xbf16, #tpu.memory_space<vmem>>, vector<384x128xbf16>
    %cst_11 = arith.constant dense<0.000000e+00> : vector<8x128xf32>
    %12 = tpu.matmul %3, %11, %cst_11 {dimension_numbers = #tpu.dot_dimension_numbers<[1], [0], [0], [1], [0, 0, 1, 1], [], []>} : vector<8x384xbf16>, vector<384x128xbf16>, vector<8x128xf32> -> vector<8x128xf32>
    %c0_12 = arith.constant 0 : index
    %c0_13 = arith.constant 0 : index
    %13 = vector.load %arg7[%c0_12, %c0_13] : memref<1x128xf32, #tpu.memory_space<vmem>>, vector<1x128xf32>
    %14 = vector.broadcast %13 : vector<1x128xf32> to vector<8x128xf32>
    %15 = arith.addf %12, %14 : vector<8x128xf32>
    %16 = arith.negf %15 : vector<8x128xf32>
    %17 = math.exp %16 : vector<8x128xf32>
    %cst_14 = arith.constant 1.000000e+00 : f32
    %18 = vector.broadcast %cst_14 : f32 to vector<8x128xf32>
    %19 = arith.addf %18, %17 : vector<8x128xf32>
    %20 = arith.divf %18, %19 : vector<8x128xf32>
    %21 = arith.mulf %10, %20 : vector<8x128xf32>
    %22 = arith.truncf %21 : vector<8x128xf32> to vector<8x128xbf16>
    %c0_15 = arith.constant 0 : index
    %c0_16 = arith.constant 0 : index
    %23 = vector.load %arg8[%c0_15, %c0_16] : memref<128x128xbf16, #tpu.memory_space<vmem>>, vector<128x128xbf16>
    %cst_17 = arith.constant dense<0.000000e+00> : vector<8x128xf32>
    %24 = tpu.matmul %22, %23, %cst_17 {dimension_numbers = #tpu.dot_dimension_numbers<[1], [0], [0], [1], [0, 0, 1, 1], [], []>} : vector<8x128xbf16>, vector<128x128xbf16>, vector<8x128xf32> -> vector<8x128xf32>
    %c0_18 = arith.constant 0 : index
    %c0_19 = arith.constant 0 : index
    %25 = vector.load %arg9[%c0_18, %c0_19] : memref<1x128xf32, #tpu.memory_space<vmem>>, vector<1x128xf32>
    %26 = vector.broadcast %25 : vector<1x128xf32> to vector<8x128xf32>
    %27 = arith.addf %24, %26 : vector<8x128xf32>
    %28 = arith.addf %1, %27 : vector<8x128xf32>
    %cst_20 = arith.constant 0.707106769 : f32
    %29 = vector.broadcast %cst_20 : f32 to vector<8x128xf32>
    %30 = arith.mulf %28, %29 : vector<8x128xf32>
    %31 = arith.truncf %30 : vector<8x128xf32> to vector<8x128xbf16>
    %c0_21 = arith.constant 0 : index
    %c0_22 = arith.constant 0 : index
    %c0_23 = arith.constant 0 : index
    %32 = vector.load %arg14[%c0_21, %c0_22, %c0_23] : memref<1x128x128xbf16, #tpu.memory_space<vmem>>, vector<1x128x128xbf16>
    %33 = vector.shape_cast %32 : vector<1x128x128xbf16> to vector<128x128xbf16>
    %cst_24 = arith.constant dense<0.000000e+00> : vector<8x128xf32>
    %34 = tpu.matmul %31, %33, %cst_24 {dimension_numbers = #tpu.dot_dimension_numbers<[1], [0], [0], [1], [0, 0, 1, 1], [], []>} : vector<8x128xbf16>, vector<128x128xbf16>, vector<8x128xf32> -> vector<8x128xf32>
    %35 = tpu.iota {dimensions = array<i32: 1>} : vector<8x128xi32>
    %c10_i32 = arith.constant 10 : i32
    %36 = vector.broadcast %c10_i32 : i32 to vector<8x128xi32>
    %37 = arith.cmpi slt, %35, %36 : vector<8x128xi32>
    %cst_25 = arith.constant -1.000000e+30 : f32
    %38 = vector.broadcast %cst_25 : f32 to vector<8x128xf32>
    %39 = arith.select %37, %34, %38 : vector<8x128xi1>, vector<8x128xf32>
    %cst_26 = arith.constant dense<0xFF800000> : vector<8xf32>
    %40 = vector.multi_reduction <maximumf>, %39, %cst_26 [1] : vector<8x128xf32> to vector<8xf32>
    %41 = vector.shape_cast %40 : vector<8xf32> to vector<8x1xf32>
    %42 = vector.broadcast %41 : vector<8x1xf32> to vector<8x128xf32>
    %43 = arith.subf %39, %42 : vector<8x128xf32>
    %44 = math.exp %43 : vector<8x128xf32>
    %cst_27 = arith.constant dense<0.000000e+00> : vector<8xf32>
    %45 = vector.multi_reduction <add>, %44, %cst_27 [1] : vector<8x128xf32> to vector<8xf32>
    %46 = vector.shape_cast %45 : vector<8xf32> to vector<8x1xf32>
    %47 = vector.broadcast %46 : vector<8x1xf32> to vector<8x128xf32>
    %48 = arith.divf %44, %47 : vector<8x128xf32>
    %49 = arith.truncf %48 : vector<8x128xf32> to vector<8x128xbf16>
    %c0_28 = arith.constant 0 : index
    %c0_29 = arith.constant 0 : index
    %c0_30 = arith.constant 0 : index
    %50 = vector.load %arg15[%c0_28, %c0_29, %c0_30] : memref<1x128x128xbf16, #tpu.memory_space<vmem>>, vector<1x128x128xbf16>
    %51 = vector.shape_cast %50 : vector<1x128x128xbf16> to vector<128x128xbf16>
    %cst_31 = arith.constant dense<0.000000e+00> : vector<8x128xf32>
    %52 = tpu.matmul %49, %51, %cst_31 {dimension_numbers = #tpu.dot_dimension_numbers<[1], [0], [0], [1], [0, 0, 1, 1], [], []>} : vector<8x128xbf16>, vector<128x128xbf16>, vector<8x128xf32> -> vector<8x128xf32>
    %53 = arith.truncf %52 : vector<8x128xf32> to vector<8x128xbf16>
    %c0_32 = arith.constant 0 : index
    %c0_33 = arith.constant 0 : index
    %54 = vector.load %arg10[%c0_32, %c0_33] : memref<128x128xbf16, #tpu.memory_space<vmem>>, vector<128x128xbf16>
    %cst_34 = arith.constant dense<0.000000e+00> : vector<8x128xf32>
    %55 = tpu.matmul %53, %54, %cst_34 {dimension_numbers = #tpu.dot_dimension_numbers<[1], [0], [0], [1], [0, 0, 1, 1], [], []>} : vector<8x128xbf16>, vector<128x128xbf16>, vector<8x128xf32> -> vector<8x128xf32>
    %c0_35 = arith.constant 0 : index
    %c0_36 = arith.constant 0 : index
    %56 = vector.load %arg11[%c0_35, %c0_36] : memref<1x128xf32, #tpu.memory_space<vmem>>, vector<1x128xf32>
    %57 = vector.broadcast %56 : vector<1x128xf32> to vector<8x128xf32>
    %58 = arith.addf %55, %57 : vector<8x128xf32>
    %c0_37 = arith.constant 0 : index
    %c0_38 = arith.constant 0 : index
    %c0_39 = arith.constant 0 : index
    %59 = vector.load %arg16[%c0_37, %c0_38, %c0_39] : memref<1x128x128xbf16, #tpu.memory_space<vmem>>, vector<1x128x128xbf16>
    %60 = vector.shape_cast %59 : vector<1x128x128xbf16> to vector<128x128xbf16>
    %cst_40 = arith.constant dense<0.000000e+00> : vector<8x128xf32>
    %61 = tpu.matmul %31, %60, %cst_40 {dimension_numbers = #tpu.dot_dimension_numbers<[1], [0], [0], [1], [0, 0, 1, 1], [], []>} : vector<8x128xbf16>, vector<128x128xbf16>, vector<8x128xf32> -> vector<8x128xf32>
    %62 = tpu.iota {dimensions = array<i32: 1>} : vector<8x128xi32>
    %c8_i32 = arith.constant 8 : i32
    %63 = vector.broadcast %c8_i32 : i32 to vector<8x128xi32>
    %64 = arith.cmpi slt, %62, %63 : vector<8x128xi32>
    %cst_41 = arith.constant -1.000000e+30 : f32
    %65 = vector.broadcast %cst_41 : f32 to vector<8x128xf32>
    %66 = arith.select %64, %61, %65 : vector<8x128xi1>, vector<8x128xf32>
    %cst_42 = arith.constant dense<0xFF800000> : vector<8xf32>
    %67 = vector.multi_reduction <maximumf>, %66, %cst_42 [1] : vector<8x128xf32> to vector<8xf32>
    %68 = vector.shape_cast %67 : vector<8xf32> to vector<8x1xf32>
    %69 = vector.broadcast %68 : vector<8x1xf32> to vector<8x128xf32>
    %70 = arith.subf %66, %69 : vector<8x128xf32>
    %71 = math.exp %70 : vector<8x128xf32>
    %cst_43 = arith.constant dense<0.000000e+00> : vector<8xf32>
    %72 = vector.multi_reduction <add>, %71, %cst_43 [1] : vector<8x128xf32> to vector<8xf32>
    %73 = vector.shape_cast %72 : vector<8xf32> to vector<8x1xf32>
    %74 = vector.broadcast %73 : vector<8x1xf32> to vector<8x128xf32>
    %75 = arith.divf %71, %74 : vector<8x128xf32>
    %76 = arith.truncf %75 : vector<8x128xf32> to vector<8x128xbf16>
    %c0_44 = arith.constant 0 : index
    %c0_45 = arith.constant 0 : index
    %c0_46 = arith.constant 0 : index
    %77 = vector.load %arg17[%c0_44, %c0_45, %c0_46] : memref<1x128x128xbf16, #tpu.memory_space<vmem>>, vector<1x128x128xbf16>
    %78 = vector.shape_cast %77 : vector<1x128x128xbf16> to vector<128x128xbf16>
    %cst_47 = arith.constant dense<0.000000e+00> : vector<8x128xf32>
    %79 = tpu.matmul %76, %78, %cst_47 {dimension_numbers = #tpu.dot_dimension_numbers<[1], [0], [0], [1], [0, 0, 1, 1], [], []>} : vector<8x128xbf16>, vector<128x128xbf16>, vector<8x128xf32> -> vector<8x128xf32>
    %80 = arith.truncf %79 : vector<8x128xf32> to vector<8x128xbf16>
    %c0_48 = arith.constant 0 : index
    %c0_49 = arith.constant 0 : index
    %81 = vector.load %arg12[%c0_48, %c0_49] : memref<128x128xbf16, #tpu.memory_space<vmem>>, vector<128x128xbf16>
    %cst_50 = arith.constant dense<0.000000e+00> : vector<8x128xf32>
    %82 = tpu.matmul %80, %81, %cst_50 {dimension_numbers = #tpu.dot_dimension_numbers<[1], [0], [0], [1], [0, 0, 1, 1], [], []>} : vector<8x128xbf16>, vector<128x128xbf16>, vector<8x128xf32> -> vector<8x128xf32>
    %c0_51 = arith.constant 0 : index
    %c0_52 = arith.constant 0 : index
    %83 = vector.load %arg13[%c0_51, %c0_52] : memref<1x128xf32, #tpu.memory_space<vmem>>, vector<1x128xf32>
    %84 = vector.broadcast %83 : vector<1x128xf32> to vector<8x128xf32>
    %85 = arith.addf %82, %84 : vector<8x128xf32>
    %cst_53 = arith.constant 2.000000e+00 : f32
    %86 = vector.broadcast %cst_53 : f32 to vector<8x128xf32>
    %87 = arith.mulf %86, %21 : vector<8x128xf32>
    %88 = arith.addf %87, %58 : vector<8x128xf32>
    %89 = arith.addf %88, %85 : vector<8x128xf32>
    %cst_54 = arith.constant 0.707106769 : f32
    %90 = vector.broadcast %cst_54 : f32 to vector<8x128xf32>
    %91 = arith.mulf %89, %90 : vector<8x128xf32>
    %92 = arith.addf %91, %5 : vector<8x128xf32>
    %cst_55 = arith.constant 0.707106769 : f32
    %93 = vector.broadcast %cst_55 : f32 to vector<8x128xf32>
    %94 = arith.mulf %92, %93 : vector<8x128xf32>
    %c0_56 = arith.constant 0 : index
    %c0_57 = arith.constant 0 : index
    %c0_58 = arith.constant 0 : index
    %95 = vector.load %arg18[%c0_56, %c0_57, %c0_58] : memref<1x8x128xf32, #tpu.memory_space<vmem>>, vector<1x8x128xf32>
    %96 = vector.shape_cast %95 : vector<1x8x128xf32> to vector<8x128xf32>
    %97 = vector.shape_cast %75 : vector<8x128xf32> to vector<1x8x128xf32>
    tpu.vector_store %arg18[%c0_56, %c0_57, %c0_58], %97 {strides = array<i32>} : memref<1x8x128xf32, #tpu.memory_space<vmem>>, vector<1x8x128xf32>,
    %c0_59 = arith.constant 0 : index
    %c0_60 = arith.constant 0 : index
    %c0_61 = arith.constant 0 : index
    %98 = vector.load %arg19[%c0_59, %c0_60, %c0_61] : memref<1x8x128xf32, #tpu.memory_space<vmem>>, vector<1x8x128xf32>
    %99 = vector.shape_cast %98 : vector<1x8x128xf32> to vector<8x128xf32>
    %100 = vector.shape_cast %94 : vector<8x128xf32> to vector<1x8x128xf32>
    tpu.vector_store %arg19[%c0_59, %c0_60, %c0_61], %100 {strides = array<i32>} : memref<1x8x128xf32, #tpu.memory_space<vmem>>, vector<1x8x128xf32>,
    return
  }
  func.func @transform_0(%arg0: i32, %arg1: i32) -> (i32, i32, i32) {
    %c0_i32 = arith.constant 0 : i32
    %c0_i32_0 = arith.constant 0 : i32
    return %arg0, %arg1, %c0_i32 : i32, i32, i32
  }
  func.func @transform_1(%arg0: i32, %arg1: i32) -> (i32, i32, i32) {
    %c0_i32 = arith.constant 0 : i32
    %c0_i32_0 = arith.constant 0 : i32
    return %arg0, %arg1, %c0_i32 : i32, i32, i32
  }
  func.func @transform_2(%arg0: i32, %arg1: i32) -> (i32, i32) {
    %c0_i32 = arith.constant 0 : i32
    %c0_i32_0 = arith.constant 0 : i32
    %c0_i32_1 = arith.constant 0 : i32
    return %c0_i32, %c0_i32_0 : i32, i32
  }
  func.func @transform_3(%arg0: i32, %arg1: i32) -> (i32, i32) {
    %c0_i32 = arith.constant 0 : i32
    %c0_i32_0 = arith.constant 0 : i32
    %c0_i32_1 = arith.constant 0 : i32
    return %c0_i32, %c0_i32_0 : i32, i32
  }
  func.func @transform_4(%arg0: i32, %arg1: i32) -> (i32, i32) {
    %c0_i32 = arith.constant 0 : i32
    %c0_i32_0 = arith.constant 0 : i32
    %c0_i32_1 = arith.constant 0 : i32
    return %c0_i32, %c0_i32_0 : i32, i32
  }
  func.func @transform_5(%arg0: i32, %arg1: i32) -> (i32, i32) {
    %c0_i32 = arith.constant 0 : i32
    %c0_i32_0 = arith.constant 0 : i32
    %c0_i32_1 = arith.constant 0 : i32
    return %c0_i32, %c0_i32_0 : i32, i32
  }
  func.func @transform_6(%arg0: i32, %arg1: i32) -> (i32, i32) {
    %c0_i32 = arith.constant 0 : i32
    %c0_i32_0 = arith.constant 0 : i32
    %c0_i32_1 = arith.constant 0 : i32
    return %c0_i32, %c0_i32_0 : i32, i32
  }
  func.func @transform_7(%arg0: i32, %arg1: i32) -> (i32, i32) {
    %c0_i32 = arith.constant 0 : i32
    %c0_i32_0 = arith.constant 0 : i32
    %c0_i32_1 = arith.constant 0 : i32
    return %c0_i32, %c0_i32_0 : i32, i32
  }
  func.func @transform_8(%arg0: i32, %arg1: i32) -> (i32, i32) {
    %c0_i32 = arith.constant 0 : i32
    %c0_i32_0 = arith.constant 0 : i32
    %c0_i32_1 = arith.constant 0 : i32
    return %c0_i32, %c0_i32_0 : i32, i32
  }
  func.func @transform_9(%arg0: i32, %arg1: i32) -> (i32, i32) {
    %c0_i32 = arith.constant 0 : i32
    %c0_i32_0 = arith.constant 0 : i32
    %c0_i32_1 = arith.constant 0 : i32
    return %c0_i32, %c0_i32_0 : i32, i32
  }
  func.func @transform_10(%arg0: i32, %arg1: i32) -> (i32, i32) {
    %c0_i32 = arith.constant 0 : i32
    %c0_i32_0 = arith.constant 0 : i32
    %c0_i32_1 = arith.constant 0 : i32
    return %c0_i32, %c0_i32_0 : i32, i32
  }
  func.func @transform_11(%arg0: i32, %arg1: i32) -> (i32, i32) {
    %c0_i32 = arith.constant 0 : i32
    %c0_i32_0 = arith.constant 0 : i32
    %c0_i32_1 = arith.constant 0 : i32
    return %c0_i32, %c0_i32_0 : i32, i32
  }
  func.func @transform_12(%arg0: i32, %arg1: i32) -> (i32, i32, i32) {
    %c0_i32 = arith.constant 0 : i32
    %c0_i32_0 = arith.constant 0 : i32
    %c0_i32_1 = arith.constant 0 : i32
    return %arg0, %c0_i32, %c0_i32_0 : i32, i32, i32
  }
  func.func @transform_13(%arg0: i32, %arg1: i32) -> (i32, i32, i32) {
    %c0_i32 = arith.constant 0 : i32
    %c0_i32_0 = arith.constant 0 : i32
    %c0_i32_1 = arith.constant 0 : i32
    return %arg0, %c0_i32, %c0_i32_0 : i32, i32, i32
  }
  func.func @transform_14(%arg0: i32, %arg1: i32) -> (i32, i32, i32) {
    %c0_i32 = arith.constant 0 : i32
    %c0_i32_0 = arith.constant 0 : i32
    %c0_i32_1 = arith.constant 0 : i32
    return %arg0, %c0_i32, %c0_i32_0 : i32, i32, i32
  }
  func.func @transform_15(%arg0: i32, %arg1: i32) -> (i32, i32, i32) {
    %c0_i32 = arith.constant 0 : i32
    %c0_i32_0 = arith.constant 0 : i32
    %c0_i32_1 = arith.constant 0 : i32
    return %arg0, %c0_i32, %c0_i32_0 : i32, i32, i32
  }
  func.func @transform_16(%arg0: i32, %arg1: i32) -> (i32, i32, i32) {
    %c0_i32 = arith.constant 0 : i32
    %c0_i32_0 = arith.constant 0 : i32
    return %arg0, %arg1, %c0_i32 : i32, i32, i32
  }
  func.func @transform_17(%arg0: i32, %arg1: i32) -> (i32, i32, i32) {
    %c0_i32 = arith.constant 0 : i32
    %c0_i32_0 = arith.constant 0 : i32
    return %arg0, %arg1, %c0_i32 : i32, i32, i32
  }
}

</mosaic_0001>

<bundles_post_ra>
// kernel: decoder_block_feedback.1
= control target key start
LH: loop header
LB: loop body
LE: loop exit
PB: predicated region body
PF: predicated region fallthrough
CT: control target
= control target key end

     0   :  { %s3678_s0 = inlined_call_operand.vmem [shape: f32[2,8,128], index: 0, kind: input, shape index: {}]   ;;  %s3679_s1 = inlined_call_operand.vmem [shape: bf16[2,8,384], index: 1, kind: input, shape index: {}]   ;;  %s3680_s2 = inlined_call_operand.vmem [shape: bf16[384,128], index: 2, kind: input, shape index: {}]   ;;  %s3681_s3 = inlined_call_operand.vmem [shape: bf16[384,128], index: 3, kind: input, shape index: {}]   ;;  %s3682_s4 = inlined_call_operand.vmem [shape: f32[1,128], index: 4, kind: input, shape index: {}]   ;;  %s3683_s5 = inlined_call_operand.vmem [shape: f32[1,128], index: 5, kind: input, shape index: {}]   ;;  %s3684_s6 = inlined_call_operand.vmem [shape: bf16[128,128], index: 6, kind: input, shape index: {}]   ;;  %s3685_s7 = inlined_call_operand.vmem [shape: f32[1,128], index: 7, kind: input, shape index: {}]   ;;  %s3686_s8 = inlined_call_operand.vmem [shape: bf16[128,128], index: 8, kind: input, shape index: {}]   ;;  %s3687_s9 = inlined_call_operand.vmem [shape: f32[1,128], index: 9, kind: input, shape index: {}]   ;;  %s3688_s10 = inlined_call_operand.vmem [shape: bf16[128,128], index: 10, kind: input, shape index: {}]   ;;  %s3689_s11 = inlined_call_operand.vmem [shape: f32[1,128], index: 11, kind: input, shape index: {}]   ;;  %s3690_s12 = inlined_call_operand.vmem [shape: bf16[2,128,128], index: 12, kind: input, shape index: {}]   ;;  %s3691_s13 = inlined_call_operand.vmem [shape: bf16[2,128,128], index: 13, kind: input, shape index: {}]   ;;  %s3692_s14 = inlined_call_operand.vmem [shape: bf16[2,128,128], index: 14, kind: input, shape index: {}]   ;;  %s3693_s15 = inlined_call_operand.vmem [shape: bf16[2,128,128], index: 15, kind: input, shape index: {}]   ;;  %s3694_s16 = inlined_call_operand.hbm [shape: f32[2,8,128], index: 16, kind: output, shape index: {0}]   ;;  %s3695_s17 = inlined_call_operand.hbm [shape: f32[2,8,128], index: 17, kind: output, shape index: {1}]  }
   0x1   :  { %3702 = sst [smem:[#allocation14_spill]] %s3678_s0 }
   0x2   :  { %3703 = sst [smem:[#allocation15_spill]] %s3679_s1 }
   0x3   :  { %3704 = sst [smem:[#allocation16_spill]] %s3680_s2 }
   0x4   :  { %3705 = sst [smem:[#allocation17_spill]] %s3681_s3 }
   0x5   :  { %3706 = sst [smem:[#allocation18_spill]] %s3690_s12 }
   0x6   :  { %3707 = sst [smem:[#allocation19_spill]] %s3695_s17 }
   0x7   :  { %23 = vsyncpa [#allocation3], 0 }
   0x8   :  { %25 = vsyncpa [#allocation3 + $0x1], 0 }
   0x9   :  { %26 = vsyncpa [#allocation5], 0 }
   0xa   :  { %28 = vsyncpa [#allocation5 + $0x1], 0  ;;  %s3114_s24 = smov 0   ;;  %s3116_s25 = smov 0  }
   0xb   :  { %s3118_s26 = smov 0   ;;  %s3120_s27 = smov 0  }
   0xc   :  { %s3122_s28 = smov 0   ;;  %s3124_s29 = smov 0  }
   0xd LB: > { %3708 = sst [smem:[#allocation8_spill]] %s2998_s24  ;;  %s2273_s0 = sadd.s32 4294967295, %s3018_s29   ;;  %s3018_s29 = sphi %s3124_s29, %s34_s29   ;;  %s3014_s28 = sphi %s3122_s28, %s3728_s28   ;;  %s3010_s27 = sphi %s3120_s27, %s3727_s27   ;;  %s3006_s26 = sphi %s3118_s26, %s3726_s26   ;;  %s3002_s25 = sphi %s3116_s25, %s3730_s25   ;;  %s2998_s24 = sphi %s3114_s24, %s3729_s24  }
   0xe   : > { %3709 = sst [smem:[#allocation9_spill]] %s3006_s26  ;;  %s2274_s30 = sadd.s32 4294967294, %s3018_s29  }
   0xf   : > { %3710 = sst [smem:[#allocation10_spill]] %s3014_s28  ;;  %s46_s18 = sadd.s32 1, %s3014_s28 }
  0x10   : > { %s425_s19 = sadd.s32 1, %s3006_s26  ;;  %p48_p0 = scmp.ge.s32.totalorder %s46_s18, 2 }
  0x11   : > { %p435_p1 = scmp.ne.s32.totalorder %s3006_s26, %s3002_s25  ;;  %p436_p2 = scmp.eq.s32.totalorder %s2273_s0, 1 }
  0x12   : > { %p441_p3 = scmp.ne.s32.totalorder %s3002_s25, %s2998_s24  ;;  %s3732_s18 = smov (%p48_p0, %s46_s18), 0 }
  0x13   : > { %3711 = sst [smem:[#allocation11_spill]] %s3732_s18  ;;  %p3154_p4 = por %p436_p2, %p435_p1 }
  0x14   : > { %p442_p5 = scmp.eq.s32.totalorder %s2274_s30, 1  ;;  %s420_s20 = ssub.s32 %s3014_s28, %s3732_s18 }
  0x15   : > { %p2277_p6 = scmp.ge.s32.totalorder %s3018_s29, 1  ;;  %p423_p7 = scmp.eq.s32.totalorder %s420_s20, 0 }
  0x16   : > { %p3161_p8 = por %p442_p5, %p441_p3  ;;  %p572_p9 = scmp.lt.s32.totalorder %s3018_s29, 3 }
  0x17   : > { %s3167_s22 = scalar_select %p423_p7, %s3006_s26, %s425_s19  }
  0x18   : > { %s3713_s21 = scalar_select %p3161_p8, 1, 0 }
  0x19   : > { %3715 = sst [smem:[#allocation13_spill]] %s3167_s22  ;;  %p573_p10 = pnand %p2277_p6, %p572_p9 }
  0x1a   : > { %3714 = sst [smem:[#allocation12_spill]] %s3713_s21  ;;  %s3716_s2 = sld [smem:[#allocation16_spill]] (!%p573_p10)  ;;  %v3020_v2 = vmov (!%p573_p10), 0.0   ;;  %vm3021_vm0 = vmmov (!%p573_p10), 0   ;;  %v2839_v54 = vld [vmem:[%s3684_s6] sm:$0xff] (!%p573_p10)   ;;  %v2840_v55 = vld [vmem:[%s3684_s6 + $0x8] sm:$0xff] (!%p573_p10)  }
  0x1b   : > { %576 = sbr.rel (%p573_p10) target bundleno = 2102 (0x836), region = 84  ;;  %2538 = vmatprep.subr.bf16.mxu1 (!%p573_p10), %v3020_v2  ;;  %2554 = vmatprep.mubr.msk.bf16.mxu1 (!%p573_p10), %vm3021_vm0, %v3020_v2  ;;  %p660_p11 = scmp.lt.s32.totalorder (!%p573_p10), %s3010_s27, 1  ;;  %v2841_v56 = vld [vmem:[%s3684_s6 + $0x10] sm:$0xff] (!%p573_p10)   ;;  %v2842_v57 = vld [vmem:[%s3684_s6 + $0x18] sm:$0xff] (!%p573_p10)   ;;  %v2843_v58 = vld [vmem:[%s3684_s6 + $0x20] sm:$0xff] (!%p573_p10)  }
  0x1c   : > { %s3717_s26 = sld [smem:[#allocation15_spill]] (!%p573_p10)  ;;  %s3718_s3 = sld [smem:[#allocation17_spill]] (!%p573_p10)  ;;  %v2844_v59 = vld [vmem:[%s3684_s6 + $0x28] sm:$0xff] (!%p573_p10)   ;;  %v2845_v60 = vld [vmem:[%s3684_s6 + $0x30] sm:$0xff] (!%p573_p10)   ;;  %v2846_v61 = vld [vmem:[%s3684_s6 + $0x38] sm:$0xff] (!%p573_p10)  }
  0x1d   : > { %s3719_s12 = sld [smem:[#allocation18_spill]] (!%p573_p10)  ;;  %s3720_s18 = sld [smem:[#allocation14_spill]] (!%p573_p10) }
  0x20   : > { %v2788_v0 = vld [vmem:[%s3716_s2 + $0x40] sm:$0xff] (!%p573_p10)   ;;  %v2791_v4 = vld [vmem:[%s3716_s2 + $0x48] sm:$0xff] (!%p573_p10)   ;;  %v2794_v7 = vld [vmem:[%s3716_s2 + $0x50] sm:$0xff] (!%p573_p10)  }
  0x21   : > { %v2789_v1 = vld [vmem:[%s3716_s2] sm:$0xff] (!%p573_p10)   ;;  %2413 = vmatprep.subr.bf16.mxu0 (!%p573_p10), %v2788_v0  ;;  %v2792_v5 = vld [vmem:[%s3716_s2 + $0x8] sm:$0xff] (!%p573_p10)   ;;  %v2795_v8 = vld [vmem:[%s3716_s2 + $0x10] sm:$0xff] (!%p573_p10)  }
  0x22   : > { %v2790_v3 = vld [vmem:[%s3716_s2 + $0x80] sm:$0xff]   ;;  %2414 = vmatpush3.bf16.msra.mxu0 %v2789_v1  ;;  %v2793_v6 = vld [vmem:[%s3716_s2 + $0x88] sm:$0xff]   ;;  %v2796_v9 = vld [vmem:[%s3716_s2 + $0x90] sm:$0xff]   ;;  %s3215_s28 = scalar_select %p660_p11, %s3010_s27, 1 }
  0x23   : > { %2539 = vmatpush3.bf16.msra.mxu1 %v2790_v3  ;;  %2415 = vmatprep.subr.bf16.mxu0 %v2791_v4  ;;  %v2797_v10 = vld [vmem:[%s3716_s2 + $0x58] sm:$0xff]   ;;  %v2800_v13 = vld [vmem:[%s3716_s2 + $0x60] sm:$0xff]   ;;  %v2803_v16 = vld [vmem:[%s3716_s2 + $0x68] sm:$0xff]  }
  0x24   : > { %2540 = vmatprep.subr.bf16.mxu1 %v3020_v2  ;;  %v2798_v11 = vld [vmem:[%s3716_s2 + $0x18] sm:$0xff]   ;;  %v2801_v14 = vld [vmem:[%s3716_s2 + $0x20] sm:$0xff]   ;;  %s2725_s17 = smul.u32 12, %s3215_s28  ;;  %v2804_v17 = vld [vmem:[%s3716_s2 + $0x28] sm:$0xff]   ;;  %s3321_s22 = sshll.u32 %s3215_s28, 6 }
  0x25   : > { %v2799_v12 = vld [vmem:[%s3716_s2 + $0x98] sm:$0xff]   ;;  %v2802_v15 = vld [vmem:[%s3716_s2 + $0xa0] sm:$0xff]   ;;  %v2805_v18 = vld [vmem:[%s3716_s2 + $0xa8] sm:$0xff]   ;;  %s3340_s23 = scalar_lea.vmem %s3719_s12, %s3321_s22  ;;  %s3360_s30 = scalar_lea.vmem %s3691_s13, %s3321_s22 }
  0x26   : > { %2416 = vmatpush3.bf16.msra.mxu0 %v2792_v5  ;;  %v2806_v19 = vld [vmem:[%s3716_s2 + $0x70] sm:$0xff]   ;;  %s3241_s21 = scalar_lea.vmem %s3717_s26, %s2725_s17  ;;  %v2809_v23 = vld [vmem:[%s3716_s2 + $0x78] sm:$0xff]   ;;  %v2814_v28 = vld [vmem:[%s3718_s3 + $0x40] sm:$0xff]   ;;  %s3370_s19 = scalar_lea.vmem %s3692_s14, %s3321_s22 }
  0x27   : > { %2541 = vmatpush3.bf16.msra.mxu1 %v2793_v6  ;;  %2417 = vmatprep.subr.bf16.mxu0 %v2794_v7  ;;  %v2807_v20 = vld [vmem:[%s3716_s2 + $0x30] sm:$0xff]   ;;  %v698_v22 = vld [vmem:[%s3241_s21] sm:$0xff]  ;;  %v2810_v25 = vld [vmem:[%s3716_s2 + $0x38] sm:$0xff]   ;;  %s3384_s0 = scalar_lea.vmem %s3693_s15, %s3321_s22 }
  0x28   : > { %2542 = vmatprep.subr.bf16.mxu1 %v3020_v2  ;;  %v2808_v21 = vld [vmem:[%s3716_s2 + $0xb0] sm:$0xff]   ;;  %v2292_v24 = vcombine.high %v698_v22, %v698_v22  ;;  %v699_v26 = vld [vmem:[%s3241_s21 + $0x8] sm:$0xf]  ;;  %v2813_v27 = vld [vmem:[%s3716_s2 + $0xb8] sm:$0xff]   ;;  %v3266_v29 = vcombine.low %v698_v22, %v698_v22  ;;  %s2405_s2 = sshll.u32 %s3010_s27, 7 }
  0x29   : > { %v2815_v30 = vld [vmem:[%s3718_s3] sm:$0xff]   ;;  %v3271_v31 = vcombine.low %v699_v26, %v699_v26  ;;  %v2818_v33 = vld [vmem:[%s3718_s3 + $0x48] sm:$0xff]   ;;  %v2821_v36 = vld [vmem:[%s3718_s3 + $0x50] sm:$0xff]  }
  0x2a   : > { %2418 = vmatpush3.bf16.msra.mxu0 %v2795_v8  ;;  %943 = vmatprep.mubr.bf16.mxu0 %v2292_v24  ;;  %v2817_v32 = vld [vmem:[%s3718_s3 + $0x80] sm:$0xff]   ;;  %v2819_v34 = vld [vmem:[%s3718_s3 + $0x8] sm:$0xff]   ;;  %v2822_v37 = vld [vmem:[%s3718_s3 + $0x10] sm:$0xff]  }
  0x2b   : > { %2543 = vmatpush3.bf16.msra.mxu1 %v2796_v9  ;;  %2419 = vmatprep.subr.bf16.mxu0 %v2797_v10  ;;  %v2820_v35 = vld [vmem:[%s3718_s3 + $0x88] sm:$0xff]   ;;  %v2823_v38 = vld [vmem:[%s3718_s3 + $0x90] sm:$0xff]   ;;  %v2824_v39 = vld [vmem:[%s3718_s3 + $0x58] sm:$0xff]  }
  0x2c   : > { %2544 = vmatprep.subr.bf16.mxu1 %v3020_v2  ;;  %v2825_v40 = vld [vmem:[%s3718_s3 + $0x18] sm:$0xff]   ;;  %v2827_v42 = vld [vmem:[%s3718_s3 + $0x60] sm:$0xff]   ;;  %v2830_v45 = vld [vmem:[%s3718_s3 + $0x68] sm:$0xff]  }
  0x2d   : > { %v2826_v41 = vld [vmem:[%s3718_s3 + $0x98] sm:$0xff]   ;;  %v2828_v43 = vld [vmem:[%s3718_s3 + $0x20] sm:$0xff]   ;;  %v2831_v46 = vld [vmem:[%s3718_s3 + $0x28] sm:$0xff]  }
  0x2e   : > { %2420 = vmatpush3.bf16.msra.mxu0 %v2798_v11  ;;  %v2829_v44 = vld [vmem:[%s3718_s3 + $0xa0] sm:$0xff]   ;;  %v2832_v47 = vld [vmem:[%s3718_s3 + $0xa8] sm:$0xff]   ;;  %v2833_v48 = vld [vmem:[%s3718_s3 + $0x70] sm:$0xff]  }
  0x2f   : > { %2545 = vmatpush3.bf16.msra.mxu1 %v2799_v12  ;;  %2421 = vmatprep.subr.bf16.mxu0 %v2800_v13  ;;  %v2834_v49 = vld [vmem:[%s3718_s3 + $0x30] sm:$0xff]   ;;  %v2836_v51 = vld [vmem:[%s3718_s3 + $0x78] sm:$0xff]   ;;  %v2847_v62 = vld [vmem:[%s3340_s23] sm:$0xff]  }
  0x30   : > { %2546 = vmatprep.subr.bf16.mxu1 %v3020_v2  ;;  %v2835_v50 = vld [vmem:[%s3718_s3 + $0xb0] sm:$0xff]   ;;  %v2837_v52 = vld [vmem:[%s3718_s3 + $0x38] sm:$0xff]   ;;  %v2848_v63 = vld [vmem:[%s3340_s23 + $0x8] sm:$0xff]  }
  0x31   : > { %v2838_v53 = vld [vmem:[%s3718_s3 + $0xb8] sm:$0xff]   ;;  %v2849_v0 = vld [vmem:[%s3340_s23 + $0x10] sm:$0xff]   ;;  %v2851_v3 = vld [vmem:[%s3340_s23 + $0x20] sm:$0xff]   ;;  %s2280_s3 = sshll.u32 %s3215_s28, 3 }
  0x32   : > { %2422 = vmatpush3.bf16.msra.mxu0 %v2801_v14  ;;  %v2850_v1 = vld [vmem:[%s3340_s23 + $0x18] sm:$0xff]   ;;  %v2852_v4 = vld [vmem:[%s3340_s23 + $0x28] sm:$0xff]   ;;  %v2290_v7 = vld [vmem:[%s3682_s4] ss:$0 sm:$0xff]  ;;  %s666_s22 = scalar_lea.vmem %s3720_s18, %s2280_s3 }
  0x33   : > { %2547 = vmatpush3.bf16.msra.mxu1 %v2802_v15  ;;  %2423 = vmatprep.subr.bf16.mxu0 %v2803_v16 }
  0x34   : > { %2548 = vmatprep.subr.bf16.mxu1 %v3020_v2 }
  0x36   : > { %2424 = vmatpush3.bf16.msra.mxu0 %v2804_v17 }
  0x37   : > { %2549 = vmatpush3.bf16.msra.mxu1 %v2805_v18  ;;  %2425 = vmatprep.subr.bf16.mxu0 %v2806_v19  ;;  %v2318_v19 = vld [vmem:[%s3683_s5] ss:$0 sm:$0xff] }
  0x38   : > { %2550 = vmatprep.subr.bf16.mxu1 %v3020_v2 }
  0x3a   : > { %2426 = vmatpush3.bf16.msra.mxu0 %v2807_v20 }
  0x3b   : > { %2551 = vmatpush3.bf16.msra.mxu1 %v2808_v21  ;;  %2427 = vmatprep.subr.bf16.mxu0 %v2809_v23 }
  0x3c   : > { %2552 = vmatprep.subr.bf16.mxu1 %v3020_v2 }
  0x3e   : > { %2428 = vmatpush3.bf16.msra.mxu0 %v2810_v25 }
  0x3f   : > { %2553 = vmatpush3.bf16.msra.mxu1 %v2813_v27  ;;  %2444 = vmatprep.subr.bf16.mxu0 %v2814_v28 }
  0x40   : > { %2558 = vmatprep.subr.bf16.mxu1 %v3020_v2 }
  0x41   : > { %944 = vmatmul.mubr.bf16.vlgmr.msra.gmra.mrb[0].mxu0 %v3266_v29 }
  0x42   : > { %2445 = vmatpush3.bf16.msra.mxu0 %v2815_v30  ;;  %2555 = vmatmul.mubr.bf16.vlgmr.msra.gmra.mrb[0].mxu1 %v3271_v31 }
  0x43   : > { %2559 = vmatpush3.bf16.msra.mxu1 %v2817_v32  ;;  %2446 = vmatprep.subr.bf16.mxu0 %v2818_v33 }
  0x44   : > { %2560 = vmatprep.subr.bf16.mxu1 %v3020_v2  ;;  %1222 = vmatprep.mubr.bf16.mxu0 %v2292_v24 }
  0x45   : > { %2574 = vmatprep.mubr.msk.bf16.mxu1 %vm3021_vm0, %v3020_v2 }
  0x46   : > { %2447 = vmatpush3.bf16.msra.mxu0 %v2819_v34 }
  0x47   : > { %2561 = vmatpush3.bf16.msra.mxu1 %v2820_v35  ;;  %2448 = vmatprep.subr.bf16.mxu0 %v2821_v36  ;;  %v2853_v35 = vld [vmem:[%s3340_s23 + $0x30] sm:$0xff]   ;;  %v2854_v36 = vld [vmem:[%s3340_s23 + $0x38] sm:$0xff]   ;;  %s3594_s23 = scalar_lea.hbm %s3694_s16, %s2405_s2 }
  0x48   : > { %2562 = vmatprep.subr.bf16.mxu1 %v3020_v2 }
  0x4a   : > { %2449 = vmatpush3.bf16.msra.mxu0 %v2822_v37  ;;  %v2344_v37 = vld [vmem:[%s3685_s7] ss:$0 sm:$0xff] }
  0x4b   : > { %2563 = vmatpush3.bf16.msra.mxu1 %v2823_v38  ;;  %2450 = vmatprep.subr.bf16.mxu0 %v2824_v39  ;;  %v697_v38 = vld [vmem:[%s666_s22] sm:$0xff] }
  0x4c   : > { %2564 = vmatprep.subr.bf16.mxu1 %v3020_v2 }
  0x4e   : > { %2451 = vmatpush3.bf16.msra.mxu0 %v2825_v40 }
  0x4f   : > { %2565 = vmatpush3.bf16.msra.mxu1 %v2826_v41  ;;  %2452 = vmatprep.subr.bf16.mxu0 %v2827_v42 }
  0x50   : > { %2566 = vmatprep.subr.bf16.mxu1 %v3020_v2 }
  0x52   : > { %2453 = vmatpush3.bf16.msra.mxu0 %v2828_v43 }
  0x53   : > { %2567 = vmatpush3.bf16.msra.mxu1 %v2829_v44  ;;  %2454 = vmatprep.subr.bf16.mxu0 %v2830_v45 }
  0x54   : > { %2568 = vmatprep.subr.bf16.mxu1 %v3020_v2 }
  0x56   : > { %2455 = vmatpush3.bf16.msra.mxu0 %v2831_v46 }
  0x57   : > { %2569 = vmatpush3.bf16.msra.mxu1 %v2832_v47  ;;  %2456 = vmatprep.subr.bf16.mxu0 %v2833_v48  ;;  %v1496_v47 = vlaneseq }
  0x58   : > { %2570 = vmatprep.subr.bf16.mxu1 %v3020_v2 }
  0x59   : > { %v3458_v48 = vand.u32 127, %v1496_v47 }
  0x5a   : > { %2457 = vmatpush3.bf16.msra.mxu0 %v2834_v49 }
  0x5b   : > { %2571 = vmatpush3.bf16.msra.mxu1 %v2835_v50  ;;  %2458 = vmatprep.subr.bf16.mxu0 %v2836_v51  ;;  %vm1498_vm1 = vcmp.lt.s32.totalorder %v3458_v48, 10  ;;  %vm1830_vm2 = vcmp.lt.s32.totalorder %v3458_v48, 8 }
  0x5c   : > { %2572 = vmatprep.subr.bf16.mxu1 %v3020_v2 }
  0x5e   : > { %2459 = vmatpush3.bf16.msra.mxu0 %v2837_v52 }
  0x5f   : > { %2573 = vmatpush3.bf16.msra.mxu1 %v2838_v53  ;;  %2578 = vmatprep.subr.bf16.mxu0 %v3020_v2 }
  0x60   : > { %2598 = vmatprep.subr.bf16.mxu1 %v3020_v2 }
  0x61   : > { %1223 = vmatmul.mubr.bf16.vlgmr.msra.gmra.mrb[4].mxu0 %v3266_v29 }
  0x62   : > { %2575 = vmatmul.mubr.bf16.vlgmr.msra.gmra.mrb[4].mxu1 %v3271_v31  ;;  %2594 = vmatprep.mubr.msk.bf16.mxu0 %vm3021_vm0, %v3020_v2 }
  0x63   : > { %2614 = vmatprep.mubr.msk.bf16.mxu1 %vm3021_vm0, %v3020_v2  ;;  %2579 = vmatpush3.bf16.msra.mxu0 %v2839_v54  ;;  %v2855_v54 = vld [vmem:[%s3360_s30] sm:$0xff]  }
  0x64   : > { %2580 = vmatprep.subr.bf16.mxu0 %v3020_v2  ;;  %2599 = vmatpush3.bf16.msra.mxu1 %v2847_v62 }
  0x65   : > { %2600 = vmatprep.subr.bf16.mxu1 %v3020_v2 }
  0x67   : > { %2581 = vmatpush3.bf16.msra.mxu0 %v2840_v55  ;;  %v2856_v55 = vld [vmem:[%s3360_s30 + $0x8] sm:$0xff]  }
  0x68   : > { %2582 = vmatprep.subr.bf16.mxu0 %v3020_v2  ;;  %2601 = vmatpush3.bf16.msra.mxu1 %v2848_v63  ;;  %v2860_v63 = vld [vmem:[%s3360_s30 + $0x28] sm:$0xff]  }
  0x69   : > { %2602 = vmatprep.subr.bf16.mxu1 %v3020_v2 }
  0x6b   : > { %2583 = vmatpush3.bf16.msra.mxu0 %v2841_v56  ;;  %v2857_v56 = vld [vmem:[%s3360_s30 + $0x10] sm:$0xff]  }
  0x6c   : > { %2584 = vmatprep.subr.bf16.mxu0 %v3020_v2  ;;  %2603 = vmatpush3.bf16.msra.mxu1 %v2849_v0  ;;  %v2861_v0 = vld [vmem:[%s3360_s30 + $0x30] sm:$0xff]  }
  0x6d   : > { %2604 = vmatprep.subr.bf16.mxu1 %v3020_v2 }
  0x6f   : > { %2585 = vmatpush3.bf16.msra.mxu0 %v2842_v57  ;;  %v2858_v57 = vld [vmem:[%s3360_s30 + $0x18] sm:$0xff]  }
  0x70   : > { %2586 = vmatprep.subr.bf16.mxu0 %v3020_v2  ;;  %2605 = vmatpush3.bf16.msra.mxu1 %v2850_v1  ;;  %v2862_v1 = vld [vmem:[%s3360_s30 + $0x38] sm:$0xff]  }
  0x71   : > { %2606 = vmatprep.subr.bf16.mxu1 %v3020_v2 }
  0x73   : > { %2587 = vmatpush3.bf16.msra.mxu0 %v2843_v58  ;;  %v2859_v58 = vld [vmem:[%s3360_s30 + $0x20] sm:$0xff]   ;;  %s3022_s30 = smov [#allocation2]  }
  0x74   : > { %2588 = vmatprep.subr.bf16.mxu0 %v3020_v2  ;;  %2607 = vmatpush3.bf16.msra.mxu1 %v2851_v3  ;;  %v2871_v3 = vld [vmem:[%s3686_s8] sm:$0xff]   ;;  %s2912_s17 = sshll.u32 %s3022_s30, 4  ;;  %s2913_s17 = int_to_ptr.vmem [resolvable:$false] %s2912_s17 }
  0x75   : > { %2608 = vmatprep.subr.bf16.mxu1 %v3020_v2  ;;  %s2914_s18 = scalar_lea.vmem %s2913_s17, 256 }
  0x77   : > { %2589 = vmatpush3.bf16.msra.mxu0 %v2844_v59 }
  0x78   : > { %2590 = vmatprep.subr.bf16.mxu0 %v3020_v2  ;;  %2609 = vmatpush3.bf16.msra.mxu1 %v2852_v4  ;;  %v2872_v4 = vld [vmem:[%s3686_s8 + $0x8] sm:$0xff]  }
  0x79   : > { %2610 = vmatprep.subr.bf16.mxu1 %v3020_v2 }
  0x7b   : > { %2591 = vmatpush3.bf16.msra.mxu0 %v2845_v60 }
  0x7c   : > { %2592 = vmatprep.subr.bf16.mxu0 %v3020_v2  ;;  %2611 = vmatpush3.bf16.msra.mxu1 %v2853_v35  ;;  %v2880_v35 = vld [vmem:[%s3384_s0 + $0x8] sm:$0xff]  }
  0x7d   : > { %2612 = vmatprep.subr.bf16.mxu1 %v3020_v2 }
  0x7f   : > { %2593 = vmatpush3.bf16.msra.mxu0 %v2846_v61 }
  0x80   : > { %2618 = vmatprep.subr.bf16.mxu0 %v3020_v2  ;;  %2613 = vmatpush3.bf16.msra.mxu1 %v2854_v36  ;;  %v2881_v36 = vld [vmem:[%s3384_s0 + $0x10] sm:$0xff]  }
  0x81   : > { %2638 = vmatprep.subr.bf16.mxu1 %v3020_v2 }
 0x114   : > { %v2429_v5 = vpop.f32.mrb[0].mxu0 }
 0x115   : > { %v2430_v6 = vpop.f32.mrb[1].mxu0  ;;  %v985_v8 = vpop.f32.mrb[0].mxu1 }
 0x116   : > { %v2431_v9 = vadd.f32 %v2430_v6, %v2429_v5  ;;  %v2432_v10 = vpop.f32.mrb[2].mxu0  ;;  %v2556_v11 = vpop.f32.mrb[1].mxu1  ;;  %v2873_v5 = vld [vmem:[%s3686_s8 + $0x10] sm:$0xff]   ;;  %v2874_v6 = vld [vmem:[%s3686_s8 + $0x18] sm:$0xff]  }
 0x117   : > { %v2433_v12 = vpop.f32.mrb[3].mxu0  ;;  %v988_v13 = vpop.f32.mrb[2].mxu1 }
 0x118   : > { %v946_v14 = vadd.f32 %v2431_v9, %v2290_v7  ;;  %v2557_v15 = vpop.f32.mrb[3].mxu1  ;;  %v2875_v7 = vld [vmem:[%s3686_s8 + $0x20] sm:$0xff]   ;;  %v2877_v9 = vld [vmem:[%s3686_s8 + $0x30] sm:$0xff]  }
 0x119   : > { %v2863_v13 = vld [vmem:[%s3370_s19] sm:$0xff]   ;;  %v2864_v15 = vld [vmem:[%s3370_s19 + $0x8] sm:$0xff]  }
 0x11a   : > { %v986_v16 = vadd.f32 %v985_v8, %v946_v14  ;;  %v2876_v8 = vld [vmem:[%s3686_s8 + $0x28] sm:$0xff]  }
 0x134   : > { %v2460_v17 = vpop.f32.mrb[4].mxu0 }
 0x135   : > { %v2461_v18 = vpop.f32.mrb[5].mxu0  ;;  %v1264_v20 = vpop.f32.mrb[4].mxu1 }
 0x136   : > { %v2462_v21 = vadd.f32 %v2461_v18, %v2460_v17  ;;  %v2463_v22 = vpop.f32.mrb[6].mxu0  ;;  %v2576_v23 = vpop.f32.mrb[5].mxu1  ;;  %v2866_v17 = vld [vmem:[%s3370_s19 + $0x18] sm:$0xff]   ;;  %v2867_v18 = vld [vmem:[%s3370_s19 + $0x20] sm:$0xff]  }
 0x137   : > { %v2464_v24 = vpop.f32.mrb[7].mxu0  ;;  %v1267_v25 = vpop.f32.mrb[6].mxu1  ;;  %v2878_v22 = vld [vmem:[%s3686_s8 + $0x38] sm:$0xff]  }
 0x138   : > { %v1225_v26 = vadd.f32 %v2462_v21, %v2318_v19  ;;  %v2577_v27 = vpop.f32.mrb[7].mxu1  ;;  %v2868_v19 = vld [vmem:[%s3370_s19 + $0x28] sm:$0xff]   ;;  %v2870_v21 = vld [vmem:[%s3370_s19 + $0x38] sm:$0xff]  }
 0x13a   : > { %v1265_v28 = vadd.f32 %v1264_v20, %v1225_v26  ;;  %v2869_v20 = vld [vmem:[%s3370_s19 + $0x30] sm:$0xff]  }
 0x13c   : > { %v2343_v29 = vmul.f32 -1.442695, %v1265_v28 }
 0x13e   : > { %2895 = vpow2.f32 %v2343_v29 }
 0x148   : > { %v2896_v30 = vpop.eup %2895 }
 0x149   : > { %v1273_v31 = vadd.f32 1.0, %v2896_v30 }
 0x14b   : > { %2897 = vrcp.f32 %v1273_v31 }
 0x155   : > { %v2898_v32 = vpop.eup %2897 }
 0x156   : > { %v3436_v33 = vmul.f32 %v2898_v32, %v986_v16  ;;  %v2865_v16 = vld [vmem:[%s3370_s19 + $0x10] sm:$0xff]   ;;  %s3547_s19 = sand.u32 1, %s3002_s25  }
 0x157   : > { %s2278_s3 = sshll.u32 %s3547_s19, 3  ;;  %s2067_s26 = scalar_lea.sflag [#allocation3], %s3547_s19 }
 0x158   : > { %v1277_v34 = vpack.c.bf16 %v3436_v33, %v3436_v33 }
 0x15a   : > { %2595 = vmatmul.mubr.bf16.vlgmr.msra.gmra.mrb[8].mxu0 %v1277_v34  ;;  %v2879_v34 = vld [vmem:[%s3384_s0] sm:$0xff]  }
 0x15b   : > { %2634 = vmatprep.mubr.msk.bf16.mxu0 %vm3021_vm0, %v3020_v2  ;;  %2619 = vmatpush3.bf16.msra.mxu0 %v2855_v54  ;;  %v2891_v54 = vld [vmem:[%s3688_s10 + $0x20] sm:$0xff]  }
 0x15c   : > { %2620 = vmatprep.subr.bf16.mxu0 %v3020_v2 }
 0x15f   : > { %2621 = vmatpush3.bf16.msra.mxu0 %v2856_v55  ;;  %v2892_v55 = vld [vmem:[%s3688_s10 + $0x28] sm:$0xff]  }
 0x160   : > { %2622 = vmatprep.subr.bf16.mxu0 %v3020_v2 }
 0x163   : > { %2623 = vmatpush3.bf16.msra.mxu0 %v2857_v56  ;;  %v2893_v56 = vld [vmem:[%s3688_s10 + $0x30] sm:$0xff]  }
 0x164   : > { %2624 = vmatprep.subr.bf16.mxu0 %v3020_v2 }
 0x167   : > { %2625 = vmatpush3.bf16.msra.mxu0 %v2858_v57  ;;  %v2894_v57 = vld [vmem:[%s3688_s10 + $0x38] sm:$0xff]  }
 0x168   : > { %2626 = vmatprep.subr.bf16.mxu0 %v3020_v2 }
 0x16b   : > { %2627 = vmatpush3.bf16.msra.mxu0 %v2859_v58 }
 0x16c   : > { %2628 = vmatprep.subr.bf16.mxu0 %v3020_v2 }
 0x16f   : > { %2629 = vmatpush3.bf16.msra.mxu0 %v2860_v63 }
 0x170   : > { %2630 = vmatprep.subr.bf16.mxu0 %v3020_v2 }
 0x173   : > { %2631 = vmatpush3.bf16.msra.mxu0 %v2861_v0 }
 0x174   : > { %2632 = vmatprep.subr.bf16.mxu0 %v3020_v2 }
 0x177   : > { %2633 = vmatpush3.bf16.msra.mxu0 %v2862_v1 }
 0x178   : > { %2658 = vmatprep.subr.bf16.mxu0 %v3020_v2 }
 0x22d   : > { %v1383_v39 = vpop.f32.mrb[8].mxu0 }
 0x22e   : > { %v1384_v40 = vadd.f32 %v2344_v37, %v1383_v39  ;;  %v2596_v41 = vpop.f32.mrb[9].mxu0  ;;  %v2882_v37 = vld [vmem:[%s3384_s0 + $0x18] sm:$0xff]  }
 0x22f   : > { %v1386_v42 = vpop.f32.mrb[10].mxu0 }
 0x230   : > { %v1389_v43 = vadd.f32 %v1384_v40, %v697_v38  ;;  %v2597_v44 = vpop.f32.mrb[11].mxu0  ;;  %v2883_v42 = vld [vmem:[%s3384_s0 + $0x20] sm:$0xff]  }
 0x231   : > { %v2885_v44 = vld [vmem:[%s3384_s0 + $0x30] sm:$0xff]  }
 0x232   : > { %v1390_v45 = vmul.f32 0.70710677, %v1389_v43  ;;  %v2884_v43 = vld [vmem:[%s3384_s0 + $0x28] sm:$0xff]  }
 0x234   : > { %v3453_v46 = vpack.c.bf16 %v1390_v45, %v1390_v45  ;;  %v2886_v45 = vld [vmem:[%s3384_s0 + $0x38] sm:$0xff]   ;;  %s3555_s0 = scalar_lea.vmem [#allocation2], %s2278_s3 }
 0x235   : > { %s2086_s20 = sshll.u32 %s3555_s0, 4  ;;  %s2087_s20 = int_to_ptr.vmem [resolvable:$true] %s2086_s20 }
 0x236   : > { %2615 = vmatmul.mubr.bf16.vlgmr.msra.gmra.mrb[8].mxu1 %v3453_v46  ;;  %s2908_s12 = scalar_lea.vmem %s2087_s20, 128  ;;  %p2915_p1 = scmp.lt.s32.totalorder %s2087_s20, %s2913_s17 }
 0x237   : > { %2654 = vmatprep.mubr.msk.bf16.mxu1 %vm3021_vm0, %v3020_v2  ;;  %2639 = vmatpush3.bf16.msra.mxu1 %v2871_v3  ;;  %p2909_p12 = scmp.ne.s32.totalorder %s2087_s20, %s2908_s12  ;;  %p2916_p2 = scmp.lt.s32.totalorder %s2914_s18, %s2908_s12 }
 0x238   : > { %2640 = vmatprep.subr.bf16.mxu1 %v3020_v2 }
 0x239   : > { %p2910_p13 = pnand %p2909_p12, %p3154_p4  ;;  %p2917_p3 = por %p2916_p2, %p2915_p1 }
 0x23b   : > { %2641 = vmatpush3.bf16.msra.mxu1 %v2872_v4  ;;  %p2911_p0 = pneg %p2910_p13 }
 0x23c   : > { %2642 = vmatprep.subr.bf16.mxu1 %v3020_v2 }
 0x23d   : > { %p2918_p5 = pnand %p2917_p3, %p2911_p0 }
 0x23f   : > { %2643 = vmatpush3.bf16.msra.mxu1 %v2873_v5 }
 0x240   : > { %2644 = vmatprep.subr.bf16.mxu1 %v3020_v2 }
 0x243   : > { %2645 = vmatpush3.bf16.msra.mxu1 %v2874_v6 }
 0x244   : > { %2646 = vmatprep.subr.bf16.mxu1 %v3020_v2 }
 0x247   : > { %2647 = vmatpush3.bf16.msra.mxu1 %v2875_v7 }
 0x248   : > { %2648 = vmatprep.subr.bf16.mxu1 %v3020_v2 }
 0x24b   : > { %2649 = vmatpush3.bf16.msra.mxu1 %v2876_v8 }
 0x24c   : > { %2650 = vmatprep.subr.bf16.mxu1 %v3020_v2 }
 0x24f   : > { %2651 = vmatpush3.bf16.msra.mxu1 %v2877_v9 }
 0x250   : > { %2652 = vmatprep.subr.bf16.mxu1 %v3020_v2 }
 0x253   : > { %2653 = vmatpush3.bf16.msra.mxu1 %v2878_v22 }
 0x254   : > { %2678 = vmatprep.subr.bf16.mxu1 %v3020_v2 }
 0x309   : > { %v1490_v49 = vpop.f32.mrb[8].mxu1 }
 0x30a   : > { %v2616_v50 = vpop.f32.mrb[9].mxu1  ;;  %v1499_v51 = vsel %vm1498_vm1, %v1490_v49, -1e+30  ;;  %v2887_v49 = vld [vmem:[%s3688_s10] sm:$0xff]  }
 0x30b   : > { %1500 = vmax.xlane.f32.xlu0 %v1499_v51  ;;  %v1493_v52 = vpop.f32.mrb[10].mxu1 }
 0x30c   : > { %v2617_v53 = vpop.f32.mrb[11].mxu1  ;;  %v2889_v52 = vld [vmem:[%s3688_s10 + $0x10] sm:$0xff]  }
 0x30d   : > { %v2890_v53 = vld [vmem:[%s3688_s10 + $0x18] sm:$0xff]  }
 0x398   : > { %v1501_v59 = vpop.xlane.xlu0 %1500 }
 0x399   : > { %v1502_v60 = vsub.f32 %v1499_v51, %v1501_v59  ;;  %v2888_v51 = vld [vmem:[%s3688_s10 + $0x8] sm:$0xff]  }
 0x39b   : > { %v1503_v61 = vmul.f32 1.442695, %v1502_v60 }
 0x39d   : > { %2899 = vpow2.f32 %v1503_v61 }
 0x3a7   : > { %v2900_v62 = vpop.eup %2899 }
 0x3a8   : > { %1505 = vadd.xlane.f32.xlu0 %v2900_v62 }
 0x435   : > { %v1506_v10 = vpop.xlane.xlu0 %1505 }
 0x436   : > { %2901 = vrcp.f32 %v1506_v10 }
 0x440   : > { %v2902_v11 = vpop.eup %2901 }
 0x441   : > { %v1508_v12 = vmul.f32 %v2902_v11, %v2900_v62 }
 0x443   : > { %v1509_v14 = vpack.c.bf16 %v1508_v12, %v1508_v12 }
 0x445   : > { %2635 = vmatmul.mubr.bf16.vlgmr.msra.gmra.mrb[12].mxu0 %v1509_v14 }
 0x446   : > { %2659 = vmatpush3.bf16.msra.mxu0 %v2863_v13  ;;  %2674 = vmatprep.mubr.msk.bf16.mxu0 %vm3021_vm0, %v3020_v2 }
 0x447   : > { %2660 = vmatprep.subr.bf16.mxu0 %v3020_v2 }
 0x44a   : > { %2661 = vmatpush3.bf16.msra.mxu0 %v2864_v15 }
 0x44b   : > { %2662 = vmatprep.subr.bf16.mxu0 %v3020_v2 }
 0x44e   : > { %2663 = vmatpush3.bf16.msra.mxu0 %v2865_v16 }
 0x44f   : > { %2664 = vmatprep.subr.bf16.mxu0 %v3020_v2 }
 0x452   : > { %2665 = vmatpush3.bf16.msra.mxu0 %v2866_v17 }
 0x453   : > { %2666 = vmatprep.subr.bf16.mxu0 %v3020_v2 }
 0x456   : > { %2667 = vmatpush3.bf16.msra.mxu0 %v2867_v18 }
 0x457   : > { %2668 = vmatprep.subr.bf16.mxu0 %v3020_v2 }
 0x45a   : > { %2669 = vmatpush3.bf16.msra.mxu0 %v2868_v19 }
 0x45b   : > { %2670 = vmatprep.subr.bf16.mxu0 %v3020_v2 }
 0x45e   : > { %2671 = vmatpush3.bf16.msra.mxu0 %v2869_v20 }
 0x45f   : > { %2672 = vmatprep.subr.bf16.mxu0 %v3020_v2 }
 0x462   : > { %2673 = vmatpush3.bf16.msra.mxu0 %v2870_v21 }
 0x465   : > { %2675 = vmatmul.mubr.bf16.vlgmr.msra.gmra.mrb[16].mxu0 %v3453_v46 }
 0x518   : > { %v1608_v23 = vpop.f32.mrb[12].mxu0 }
 0x519   : > { %v1614_v24 = vpack.c.bf16 %v1608_v23, %v1608_v23  ;;  %v2636_v25 = vpop.f32.mrb[13].mxu0 }
 0x51a   : > { %v1611_v26 = vpop.f32.mrb[14].mxu0 }
 0x51b   : > { %v2637_v27 = vpop.f32.mrb[15].mxu0  ;;  %2655 = vmatmul.mubr.bf16.vlgmr.msra.gmra.mrb[12].mxu1 %v1614_v24 }
 0x51c   : > { %2694 = vmatprep.mubr.msk.bf16.mxu1 %vm3021_vm0, %v3020_v2  ;;  %2679 = vmatpush3.bf16.msra.mxu1 %v2879_v34 }
 0x51d   : > { %2680 = vmatprep.subr.bf16.mxu1 %v3020_v2 }
 0x520   : > { %2681 = vmatpush3.bf16.msra.mxu1 %v2880_v35 }
 0x521   : > { %2682 = vmatprep.subr.bf16.mxu1 %v3020_v2 }
 0x524   : > { %2683 = vmatpush3.bf16.msra.mxu1 %v2881_v36 }
 0x525   : > { %2684 = vmatprep.subr.bf16.mxu1 %v3020_v2 }
 0x528   : > { %2685 = vmatpush3.bf16.msra.mxu1 %v2882_v37 }
 0x529   : > { %2686 = vmatprep.subr.bf16.mxu1 %v3020_v2 }
 0x52c   : > { %2687 = vmatpush3.bf16.msra.mxu1 %v2883_v42 }
 0x52d   : > { %2688 = vmatprep.subr.bf16.mxu1 %v3020_v2 }
 0x530   : > { %2689 = vmatpush3.bf16.msra.mxu1 %v2884_v43 }
 0x531   : > { %2690 = vmatprep.subr.bf16.mxu1 %v3020_v2 }
 0x534   : > { %2691 = vmatpush3.bf16.msra.mxu1 %v2885_v44 }
 0x535   : > { %2692 = vmatprep.subr.bf16.mxu1 %v3020_v2 }
 0x538   : > { %v1824_v28 = vpop.f32.mrb[16].mxu0  ;;  %2693 = vmatpush3.bf16.msra.mxu1 %v2886_v45 }
 0x539   : > { %v2676_v29 = vpop.f32.mrb[17].mxu0  ;;  %v1831_v30 = vsel %vm1830_vm2, %v1824_v28, -1e+30  ;;  %2698 = vmatprep.subr.bf16.mxu1 %v3020_v2 }
 0x53a   : > { %1832 = vmax.xlane.f32.xlu1 %v1831_v30  ;;  %v1827_v31 = vpop.f32.mrb[18].mxu0 }
 0x53b   : > { %v2677_v32 = vpop.f32.mrb[19].mxu0 }
 0x5c7   : > { %v1833_v38 = vpop.xlane.xlu1 %1832 }
 0x5c8   : > { %v1834_v39 = vsub.f32 %v1831_v30, %v1833_v38 }
 0x5ca   : > { %v1835_v40 = vmul.f32 1.442695, %v1834_v39 }
 0x5cc   : > { %2903 = vpow2.f32 %v1835_v40 }
 0x5d6   : > { %v2904_v41 = vpop.eup %2903 }
 0x5d7   : > { %1837 = vadd.xlane.f32.xlu1 %v2904_v41 }
 0x664   : > { %v1838_v46 = vpop.xlane.xlu1 %1837 }
 0x665   : > { %2905 = vrcp.f32 %v1838_v46 }
 0x66f   : > { %v2906_v47 = vpop.eup %2905 }
 0x670   : > { %v1840_v48 = vmul.f32 %v2906_v47, %v2904_v41 }
 0x672   : > { %v1841_v50 = vpack.c.bf16 %v1840_v48, %v1840_v48  ;;  %2064 = vst [vmem:[%s3555_s0] sm:$0xff] %v1840_v48 }
 0x674   : > { %2695 = vmatmul.mubr.bf16.vlgmr.msra.gmra.mrb[16].mxu1 %v1841_v50 }
 0x675   : > { %2699 = vmatpush3.bf16.msra.mxu1 %v2887_v49  ;;  %2714 = vmatprep.mubr.msk.bf16.mxu1 %vm3021_vm0, %v3020_v2 }
 0x676   : > { %2700 = vmatprep.subr.bf16.mxu1 %v3020_v2 }
 0x679   : > { %2701 = vmatpush3.bf16.msra.mxu1 %v2888_v51 }
 0x67a   : > { %2702 = vmatprep.subr.bf16.mxu1 %v3020_v2 }
 0x67d   : > { %2703 = vmatpush3.bf16.msra.mxu1 %v2889_v52 }
 0x67e   : > { %2704 = vmatprep.subr.bf16.mxu1 %v3020_v2 }
 0x681   : > { %2705 = vmatpush3.bf16.msra.mxu1 %v2890_v53 }
 0x682   : > { %2706 = vmatprep.subr.bf16.mxu1 %v3020_v2 }
 0x685   : > { %2707 = vmatpush3.bf16.msra.mxu1 %v2891_v54 }
 0x686   : > { %2708 = vmatprep.subr.bf16.mxu1 %v3020_v2 }
 0x689   : > { %2709 = vmatpush3.bf16.msra.mxu1 %v2892_v55 }
 0x68a   : > { %2710 = vmatprep.subr.bf16.mxu1 %v3020_v2 }
 0x68d   : > { %2711 = vmatpush3.bf16.msra.mxu1 %v2893_v56 }
 0x68e   : > { %2712 = vmatprep.subr.bf16.mxu1 %v3020_v2 }
 0x691   : > { %2713 = vmatpush3.bf16.msra.mxu1 %v2894_v57 }
 0x747   : > { %v1940_v58 = vpop.f32.mrb[16].mxu1 }
 0x748   : > { %v1946_v59 = vpack.c.bf16 %v1940_v58, %v1940_v58  ;;  %v2696_v60 = vpop.f32.mrb[17].mxu1 }
 0x749   : > { %v1943_v61 = vpop.f32.mrb[18].mxu1 }
 0x74a   : > { %v2697_v62 = vpop.f32.mrb[19].mxu1  ;;  %2715 = vmatmul.mubr.bf16.vlgmr.msra.gmra.mrb[12].mxu1 %v1946_v59 }
 0x74b   : > { %2921 = shalt.err (!%p2918_p5)
}
 0x74c   : > { %s2922_s0 = scalar_lea.hbm %s3594_s23, 128  ;;  %s2926_s28 = scalar_lea.hbm %s3694_s16, 256 }
 0x74d   : > { %p2923_p6 = scmp.ne.s32.totalorder %s3594_s23, %s2922_s0  ;;  %p2927_p10 = scmp.lt.u32.totalorder %s3594_s23, %s3694_s16 }
 0x74e   : > { %p2928_p11 = scmp.lt.u32.totalorder %s2926_s28, %s2922_s0  ;;  %p2930_p13 = scmp.lt.u32.totalorder %s2922_s0, %s3594_s23 }
 0x74f   : > { %p2924_p7 = pnand %p2923_p6, %p3154_p4 }
 0x750   : > { %p2929_p12 = por %p2928_p11, %p2927_p10 }
 0x751   : > { %p2925_p9 = pneg %p2924_p7 }
 0x752   : > { %p2931_p0 = por %p2930_p13, %p2929_p12 }
 0x754   : > { %p2932_p1 = pnand %p2931_p0, %p2925_p9 }
 0x756   : > { %2935 = shalt.err (!%p2932_p1)
}
 0x757   : > { %2726 = dma.vmem_to_hbm [thread:$0]  (%p3154_p4), %s2087_s20, 128, %s3594_s23, %s2067_s26   ;;  %v2369_v2 = vld [vmem:[%s3687_s9] ss:$0 sm:$0xff]  ;;  %v2058_v3 = vmul.f32 2.0, %v3436_v33  ;;  %v2907_v7 = vld [vmem:[%s3241_s21 + $0x8] sm:$0xf] }
 0x758   : > { %v2394_v63 = vld [vmem:[%s3689_s11] ss:$0 sm:$0xff]  ;;  %v700_v8 = vunpack.c.l.bf16 %v2907_v7  ;;  %s659_s23 = scalar_lea.vmem [#allocation4], %s2278_s3  ;;  %s3721_s28 = sld [smem:[#allocation19_spill]] }
 0x759   : > { %v2718_v0 = vadd.f32 %v2394_v63, %v2369_v2  ;;  %s2100_s20 = sshll.u32 %s659_s23, 4  ;;  %s2072_s21 = scalar_lea.sflag [#allocation5], %s3547_s19  ;;  %s3632_s20 = int_to_ptr.vmem [resolvable:$true] %s2100_s20 }
 0x75a   : > { %s2936_s12 = scalar_lea.vmem %s3632_s20, 128  ;;  %s3023_s3 = smov [#allocation4]  }
 0x75b   : > { %p2937_p2 = scmp.ne.s32.totalorder %s3632_s20, %s2936_s12  ;;  %s2940_s18 = sshll.u32 %s3023_s3, 4  ;;  %s2941_s18 = int_to_ptr.vmem [resolvable:$false] %s2940_s18 }
 0x75c   : > { %s2942_s27 = scalar_lea.vmem %s2941_s18, 256  ;;  %p2943_p6 = scmp.lt.s32.totalorder %s3632_s20, %s2941_s18 }
 0x75d   : > { %p2938_p3 = pnand %p2937_p2, %p3154_p4  ;;  %p2944_p7 = scmp.lt.s32.totalorder %s2942_s27, %s2936_s12 }
 0x75e   : > { %s3722_s30 = smov %s3721_s28  ;;  %s3630_s17 = scalar_lea.hbm %s3721_s28, %s2405_s2 }
 0x75f   : > { %p2939_p5 = pneg %p2938_p3  ;;  %p2945_p9 = por %p2944_p7, %p2943_p6 }
 0x761   : > { %p2946_p10 = pnand %p2945_p9, %p2939_p5 }
 0x81d   : > { %v2052_v1 = vpop.f32.mrb[12].mxu1 }
 0x81e   : > { %v2719_v4 = vadd.f32 %v2718_v0, %v2052_v1  ;;  %v2716_v5 = vpop.f32.mrb[13].mxu1 }
 0x81f   : > { %v2055_v6 = vpop.f32.mrb[14].mxu1 }
 0x820   : > { %v2720_v9 = vadd.f32 %v2719_v4, %v2058_v3  ;;  %v2717_v10 = vpop.f32.mrb[15].mxu1 }
 0x822   : > { %v2061_v11 = vmul.f32 0.70710677, %v2720_v9 }
 0x824   : > { %v2062_v12 = vadd.f32 %v2061_v11, %v700_v8 }
 0x826   : > { %v2063_v13 = vmul.f32 0.70710677, %v2062_v12 }
 0x828   : > { %2065 = vst [vmem:[%s659_s23] sm:$0xff] %v2063_v13 }
 0x829   : > { %2949 = shalt.err (!%p2946_p10)
}
 0x82a   : > { %s2950_s19 = scalar_lea.hbm %s3630_s17, 128  ;;  %s2954_s24 = scalar_lea.hbm %s3722_s30, 256 }
 0x82b   : > { %p2951_p11 = scmp.ne.s32.totalorder %s3630_s17, %s2950_s19  ;;  %p2955_p0 = scmp.lt.u32.totalorder %s3630_s17, %s3722_s30 }
 0x82c   : > { %p2956_p1 = scmp.lt.u32.totalorder %s2954_s24, %s2950_s19  ;;  %p2958_p3 = scmp.lt.u32.totalorder %s2950_s19, %s3630_s17 }
 0x82d   : > { %p2952_p12 = pnand %p2951_p11, %p3154_p4 }
 0x82e   : > { %p2957_p2 = por %p2956_p1, %p2955_p0 }
 0x82f   : > { %p2953_p13 = pneg %p2952_p12 }
 0x830   : > { %p2959_p5 = por %p2958_p3, %p2957_p2 }
 0x832   : > { %p2960_p6 = pnand %p2959_p5, %p2953_p13 }
 0x834   : > { %2963 = shalt.err (!%p2960_p6)
}
 0x835   : > { %2727 = dma.vmem_to_hbm [thread:$0]  (%p3154_p4), %s3632_s20, 128, %s3630_s17, %s2072_s21  }
 0x836 PF: > { %s3723_s0 = sld [smem:[#allocation8_spill]]  ;;  %p2737_p7 = scmp.ge.s32.totalorder %s3018_s29, 2 }
 0x838   : > { %p2731_p9 = pnand %p2737_p7, %p3161_p8 }
 0x83c   : > { %s2112_s12 = sand.u32 1, %s3723_s0  }
 0x83d   : > { %s2113_s3 = scalar_lea.sflag [#allocation3], %s2112_s12 }
 0x83e   : > { %2989 = dma.done.wait (!%p2731_p9), %s2113_s3, 128  }
 0x83f   : > { %2991 = vsyncadd (!%p2731_p9), %s2113_s3, 4294967168  ;;  %s2122_s18 = scalar_lea.sflag [#allocation5], %s2112_s12 }
 0x840   : > { %2993 = dma.done.wait (!%p2731_p9), %s2122_s18, 128  }
 0x841   : > { %2995 = vsyncadd (!%p2731_p9), %s2122_s18, 4294967168  ;;  %s34_s29 = sadd.s32 1, %s3018_s29   ;;  %s3725_s1 = sld [smem:[#allocation9_spill]] }
 0x842   : > { %p31_p10 = scmp.ge.s32.totalorder %s34_s29, 4   ;;  %s3726_s26 = sld [smem:[#allocation13_spill]] }
 0x843   : > { %s3727_s27 = sld [smem:[#allocation10_spill]]  ;;  %s3728_s28 = sld [smem:[#allocation11_spill]] }
 0x844   : > { %s3729_s24 = smov %s3002_s25  ;;  %33 = sbr.rel (!%p31_p10) target bundleno = 13 (0xd), region = 151 }
 0x847   : > { %s3730_s25 = smov %s3725_s1 }
 0x84b   :  { %2127 = vsyncpa [#allocation3], 1 }
 0x84c   :  { %2129 = vsyncpa [#allocation3 + $0x1], 1 }
 0x84d   :  { %2130 = vsyncpa [#allocation5], 1 }
 0x84e   :  { %2132 = vsyncpa [#allocation5 + $0x1], 1 }

</bundles_post_ra>
